<compile_context>
chip_gen: v6e
topology: v6e:2x2x1
jax: 0.10.0
libtpu: 0.0.40
codegen_flags: <defaults>
</compile_context>

<pallas_src>
import jax
import jax.numpy as jnp
from jax.experimental import pallas as pl
from jax.experimental.pallas import tpu as pltpu


def _round_up(x, m):
    return ((x + m - 1) // m) * m


def _cdiv(a, b):
    return (a + b - 1) // b


# ----------------------------------------------------------------------------
# Pallas kernel: fused context-net + reward head
# ----------------------------------------------------------------------------
def reward_kernel(s_ref, i_ref, ws_ref, wi_ref, bc_ref,
                  w1_ref, b1_ref, w2_ref, b2_ref, out_ref):
    # Cast activations to bf16 *inside* the kernel, right before the dot:
    # exactly one bf16 MXU pass per matmul, no wrapper-side astype HBM pass.
    s_bf = s_ref[...].astype(jnp.bfloat16)
    i_bf = i_ref[...].astype(jnp.bfloat16)

    # context_net: ctx = ReLU(state @ Ws + instr @ Wi + bc)     -> (TM, F) f32
    ctx = jnp.dot(s_bf, ws_ref[...], preferred_element_type=jnp.float32)
    ctx = ctx + jnp.dot(i_bf, wi_ref[...], preferred_element_type=jnp.float32)
    ctx = jnp.maximum(ctx + bc_ref[...], 0.0)

    # reward_layer first Linear + ReLU: (TM, F) @ (F, 128) + b1 -> (TM, 128)
    h = jnp.dot(ctx.astype(jnp.bfloat16), w1_ref[...],
                preferred_element_type=jnp.float32) + b1_ref[...]
    h = jnp.maximum(h, 0.0)

    # final Linear(128, 1) as VPU multiply + XLU lane reduction (no N=1 MXU pass)
    logit = jnp.sum(h * w2_ref[...], axis=-1, keepdims=True) + b2_ref[...]

    # Narrow (TM, 1) f32 store: 4 B/row of HBM writeback (vs 512 B/row slab).
    out_ref[...] = jax.nn.sigmoid(logit)


# ----------------------------------------------------------------------------
# Batch tiling
# ----------------------------------------------------------------------------
def _choose_tm(batch):
    # Small batches: a single full-array tile (block == array dims is always
    # legal and avoids any padding / extra grid steps).
    if batch <= 256:
        return batch
    # Large batches: >= 2 tiles so both v7x TensorCores get work, rows capped
    # at 1024 (near-roofline tile), TM a multiple of 8 sized to cdiv(B, n)
    # so the tail tile is snug instead of a whole padded extra tile.
    n_tiles = max(2, _cdiv(batch, 1024))
    return min(1024, _round_up(_cdiv(batch, n_tiles), 8))


# ----------------------------------------------------------------------------
# Wrapper
# ----------------------------------------------------------------------------
def reward_model_forward(state, instruction_embedding, params):
    """state: (B, C, H, W); instruction_embedding: (B, E). Returns (B, 1) f32."""
    B = state.shape[0]
    state_flat = state.reshape(B, -1)            # contiguous reshape: no HBM copy
    instr = instruction_embedding
    K = state_flat.shape[1]
    E = instr.shape[1]
    F = params["ws_pad"].shape[1]                # padded out_features (128)
    HID = params["w1"].shape[1]

    TM = _choose_tm(B)
    # Partial last tile is handled by Pallas: out-of-bounds input rows are
    # unspecified but each row is independent, and out-of-bounds output rows
    # are simply not written — so no jnp.pad pass over x is needed.
    grid = (_cdiv(B, TM),)

    out = pl.pallas_call(
        reward_kernel,
        out_shape=jax.ShapeDtypeStruct((B, 1), jnp.float32),
        grid=grid,
        in_specs=[
            pl.BlockSpec((TM, K), lambda i: (i, 0)),     # state tile (streamed)
            pl.BlockSpec((TM, E), lambda i: (i, 0)),     # instr tile (streamed)
            # weights / biases: same block every step -> VMEM-resident
            pl.BlockSpec((K, F), lambda i: (0, 0)),      # Ws  (K, 128) bf16
            pl.BlockSpec((E, F), lambda i: (0, 0)),      # Wi  (E, 128) bf16
            pl.BlockSpec((1, F), lambda i: (0, 0)),      # bc  (1, 128) f32
            pl.BlockSpec((F, HID), lambda i: (0, 0)),    # W1  (128, 128) bf16
            pl.BlockSpec((1, HID), lambda i: (0, 0)),    # b1  (1, 128) f32
            pl.BlockSpec((1, HID), lambda i: (0, 0)),    # W2 row (1, 128) f32
            pl.BlockSpec((1, 1), lambda i: (0, 0)),      # b2  (1, 1) f32
        ],
        out_specs=pl.BlockSpec((TM, 1), lambda i: (i, 0)),
        compiler_params=pltpu.CompilerParams(
            dimension_semantics=("parallel",)),
    )(state_flat, instr, params["ws_pad"], params["wi_pad"], params["bc"],
      params["w1"], params["b1"], params["w2_row"], params["b2"])

    return out                                            # (B, 1)


# ----------------------------------------------------------------------------
# Synthetic, deterministic parameter / input construction
# ----------------------------------------------------------------------------
def init_params(key, state_dim, embed_dim, out_features=64, hidden=128,
                f_pad=128):
    """Logical params at out_features=64, zero-padded to 128 lanes for the kernel."""
    ks = jax.random.split(key, 4)
    scale = 0.02
    # logical (f32) weights — semantics identical to the PyTorch module
    ws = scale * jax.random.normal(ks[0], (state_dim, out_features), jnp.float32)
    wi = scale * jax.random.normal(ks[1], (embed_dim, out_features), jnp.float32)
    bc = jnp.zeros((out_features,), jnp.float32)
    w1 = scale * jax.random.normal(ks[2], (out_features, hidden), jnp.float32)
    b1 = jnp.zeros((hidden,), jnp.float32)
    w2 = scale * jax.random.normal(ks[3], (hidden, 1), jnp.float32)
    b2 = jnp.zeros((1,), jnp.float32)

    # Zero-padded kernel params (padding columns/rows contribute exactly 0).
    pad_cols = f_pad - out_features
    ws_pad = jnp.pad(ws, ((0, 0), (0, pad_cols))).astype(jnp.bfloat16)   # (K, 128)
    wi_pad = jnp.pad(wi, ((0, 0), (0, pad_cols))).astype(jnp.bfloat16)   # (E, 128)
    bc_p = jnp.pad(bc, (0, pad_cols)).reshape(1, f_pad)                  # (1, 128) f32
    w1_p = jnp.pad(w1, ((0, pad_cols), (0, 0))).astype(jnp.bfloat16)     # (128, 128)

    kernel_params = {
        "ws_pad": ws_pad,
        "wi_pad": wi_pad,
        "bc": bc_p,                                   # f32
        "w1": w1_p,
        "b1": b1.reshape(1, hidden),                  # f32
        "w2_row": w2.reshape(1, hidden),              # f32, row form
        "b2": b2.reshape(1, 1),                       # f32
    }
    logical = {"ws": ws, "wi": wi, "bc": bc, "w1": w1, "b1": b1,
               "w2": w2, "b2": b2}
    return kernel_params, logical


def language_model(token_ids, embedding_table):
    # TODO(synk): the reference language_model is an arbitrary external nn.Module
    # operating on string instructions; here it is a deterministic embedding
    # lookup + mean pool (plain-JAX glue, not the hot path).
    emb = jnp.take(embedding_table, token_ids, axis=0)   # (B, L, E)
    emb = emb.mean(axis=1)                               # (B, E)
    return emb.reshape(token_ids.shape[0], -1)           # .view(len(instructions), -1)


def reference_forward(state, instr, p):
    """Pure-JAX f32 reference of the module's forward (for a sanity check)."""
    B = state.shape[0]
    sflat = state.reshape(B, -1)
    ctx = jnp.maximum(sflat @ p["ws"] + instr @ p["wi"] + p["bc"], 0.0)
    h = jnp.maximum(ctx @ p["w1"] + p["b1"], 0.0)
    return jax.nn.sigmoid(h @ p["w2"] + p["b2"])


if __name__ == "__main__":
    # Small shapes consistent with the module's forward.
    B, C, H, W = 2, 4, 16, 16          # state: NCHW
    L, V, E = 8, 50, 32                # instruction tokens / vocab / embed dim
    OUT_FEATURES, HIDDEN = 64, 128

    key = jax.random.PRNGKey(0)
    k_state, k_tok, k_emb, k_params = jax.random.split(key, 4)

    state = jax.random.normal(k_state, (B, C, H, W), jnp.float32)
    token_ids = jax.random.randint(k_tok, (B, L), 0, V)
    embedding_table = 0.1 * jax.random.normal(k_emb, (V, E), jnp.float32)
    kernel_params, logical_params = init_params(
        k_params, C * H * W, E, OUT_FEATURES, HIDDEN)

    # forward(state, instructions)
    instruction_embedding = language_model(token_ids, embedding_table)
    r = reward_model_forward(state, instruction_embedding, kernel_params)
    r = jax.block_until_ready(r)

    assert r.shape == (B, 1)
    assert bool(jnp.all((r >= 0.0) & (r <= 1.0)))

    # numerical sanity check vs. f32 reference (bf16 operands, f32 accumulation
    # and f32 output store -> tight tolerance)
    r_ref = reference_forward(state, instruction_embedding, logical_params)
    assert bool(jnp.allclose(r, r_ref, atol=2e-3)), "mismatch vs reference"

    print("KERNEL_OK")
</pallas_src>

<mosaic_0001>
module attributes {stable_mosaic.version = 11 : i64} {
  func.func @reward_kernel(%arg0: i32, %arg1: memref<2x1024xf32, #tpu.memory_space<vmem>>, %arg2: memref<2x32xf32, #tpu.memory_space<vmem>>, %arg3: memref<1024x128xbf16, #tpu.memory_space<vmem>>, %arg4: memref<32x128xbf16, #tpu.memory_space<vmem>>, %arg5: memref<1x128xf32, #tpu.memory_space<vmem>>, %arg6: memref<128x128xbf16, #tpu.memory_space<vmem>>, %arg7: memref<1x128xf32, #tpu.memory_space<vmem>>, %arg8: memref<1x128xf32, #tpu.memory_space<vmem>>, %arg9: memref<1x1xf32, #tpu.memory_space<vmem>>, %arg10: memref<2x1xf32, #tpu.memory_space<vmem>>) attributes {dimension_semantics = [#tpu.dimension_semantics<parallel>], iteration_bounds = array<i64: 1>, scalar_prefetch = 0 : i64, scratch_operands = 0 : i64, tpu.core_type = #tpu.core_type<tc>, window_params = [{transform_indices = @transform_0, window_bounds = array<i64: 2, 1024>}, {transform_indices = @transform_1, window_bounds = array<i64: 2, 32>}, {pipeline_mode = #tpu.pipeline_mode<synchronous>, transform_indices = @transform_2, window_bounds = array<i64: 1024, 128>}, {pipeline_mode = #tpu.pipeline_mode<synchronous>, transform_indices = @transform_3, window_bounds = array<i64: 32, 128>}, {pipeline_mode = #tpu.pipeline_mode<synchronous>, transform_indices = @transform_4, window_bounds = array<i64: 1, 128>}, {pipeline_mode = #tpu.pipeline_mode<synchronous>, transform_indices = @transform_5, window_bounds = array<i64: 128, 128>}, {pipeline_mode = #tpu.pipeline_mode<synchronous>, transform_indices = @transform_6, window_bounds = array<i64: 1, 128>}, {pipeline_mode = #tpu.pipeline_mode<synchronous>, transform_indices = @transform_7, window_bounds = array<i64: 1, 128>}, {pipeline_mode = #tpu.pipeline_mode<synchronous>, transform_indices = @transform_8, window_bounds = array<i64: 1, 1>}, {transform_indices = @transform_9, window_bounds = array<i64: 2, 1>}]} {
    %c0 = arith.constant 0 : index
    %c0_0 = arith.constant 0 : index
    %0 = vector.load %arg1[%c0, %c0_0] : memref<2x1024xf32, #tpu.memory_space<vmem>>, vector<2x1024xf32>
    %1 = arith.truncf %0 : vector<2x1024xf32> to vector<2x1024xbf16>
    %c0_1 = arith.constant 0 : index
    %c0_2 = arith.constant 0 : index
    %2 = vector.load %arg2[%c0_1, %c0_2] : memref<2x32xf32, #tpu.memory_space<vmem>>, vector<2x32xf32>
    %3 = arith.truncf %2 : vector<2x32xf32> to vector<2x32xbf16>
    %c0_3 = arith.constant 0 : index
    %c0_4 = arith.constant 0 : index
    %4 = vector.load %arg3[%c0_3, %c0_4] : memref<1024x128xbf16, #tpu.memory_space<vmem>>, vector<1024x128xbf16>
    %cst = arith.constant dense<0.000000e+00> : vector<2x128xf32>
    %5 = tpu.matmul %1, %4, %cst {dimension_numbers = #tpu.dot_dimension_numbers<[1], [0], [0], [1], [0, 0, 1, 1], [], []>} : vector<2x1024xbf16>, vector<1024x128xbf16>, vector<2x128xf32> -> vector<2x128xf32>
    %c0_5 = arith.constant 0 : index
    %c0_6 = arith.constant 0 : index
    %6 = vector.load %arg4[%c0_5, %c0_6] : memref<32x128xbf16, #tpu.memory_space<vmem>>, vector<32x128xbf16>
    %cst_7 = arith.constant dense<0.000000e+00> : vector<2x128xf32>
    %7 = tpu.matmul %3, %6, %cst_7 {dimension_numbers = #tpu.dot_dimension_numbers<[1], [0], [0], [1], [0, 0, 1, 1], [], []>} : vector<2x32xbf16>, vector<32x128xbf16>, vector<2x128xf32> -> vector<2x128xf32>
    %8 = arith.addf %5, %7 : vector<2x128xf32>
    %c0_8 = arith.constant 0 : index
    %c0_9 = arith.constant 0 : index
    %9 = vector.load %arg5[%c0_8, %c0_9] : memref<1x128xf32, #tpu.memory_space<vmem>>, vector<1x128xf32>
    %10 = vector.broadcast %9 : vector<1x128xf32> to vector<2x128xf32>
    %11 = arith.addf %8, %10 : vector<2x128xf32>
    %cst_10 = arith.constant 0.000000e+00 : f32
    %12 = vector.broadcast %cst_10 : f32 to vector<2x128xf32>
    %13 = arith.maximumf %11, %12 : vector<2x128xf32>
    %14 = arith.truncf %13 : vector<2x128xf32> to vector<2x128xbf16>
    %c0_11 = arith.constant 0 : index
    %c0_12 = arith.constant 0 : index
    %15 = vector.load %arg6[%c0_11, %c0_12] : memref<128x128xbf16, #tpu.memory_space<vmem>>, vector<128x128xbf16>
    %cst_13 = arith.constant dense<0.000000e+00> : vector<2x128xf32>
    %16 = tpu.matmul %14, %15, %cst_13 {dimension_numbers = #tpu.dot_dimension_numbers<[1], [0], [0], [1], [0, 0, 1, 1], [], []>} : vector<2x128xbf16>, vector<128x128xbf16>, vector<2x128xf32> -> vector<2x128xf32>
    %c0_14 = arith.constant 0 : index
    %c0_15 = arith.constant 0 : index
    %17 = vector.load %arg7[%c0_14, %c0_15] : memref<1x128xf32, #tpu.memory_space<vmem>>, vector<1x128xf32>
    %18 = vector.broadcast %17 : vector<1x128xf32> to vector<2x128xf32>
    %19 = arith.addf %16, %18 : vector<2x128xf32>
    %cst_16 = arith.constant 0.000000e+00 : f32
    %20 = vector.broadcast %cst_16 : f32 to vector<2x128xf32>
    %21 = arith.maximumf %19, %20 : vector<2x128xf32>
    %c0_17 = arith.constant 0 : index
    %c0_18 = arith.constant 0 : index
    %22 = vector.load %arg8[%c0_17, %c0_18] : memref<1x128xf32, #tpu.memory_space<vmem>>, vector<1x128xf32>
    %23 = vector.broadcast %22 : vector<1x128xf32> to vector<2x128xf32>
    %24 = arith.mulf %21, %23 : vector<2x128xf32>
    %cst_19 = arith.constant dense<0.000000e+00> : vector<2xf32>
    %25 = vector.multi_reduction <add>, %24, %cst_19 [1] : vector<2x128xf32> to vector<2xf32>
    %26 = vector.shape_cast %25 : vector<2xf32> to vector<2x1xf32>
    %c0_20 = arith.constant 0 : index
    %c0_21 = arith.constant 0 : index
    %27 = vector.load %arg9[%c0_20, %c0_21] : memref<1x1xf32, #tpu.memory_space<vmem>>, vector<1x1xf32>
    %28 = vector.broadcast %27 : vector<1x1xf32> to vector<2x1xf32>
    %29 = arith.addf %26, %28 : vector<2x1xf32>
    %30 = arith.negf %29 : vector<2x1xf32>
    %31 = math.exp %30 : vector<2x1xf32>
    %cst_22 = arith.constant 1.000000e+00 : f32
    %32 = vector.broadcast %cst_22 : f32 to vector<2x1xf32>
    %33 = arith.addf %32, %31 : vector<2x1xf32>
    %34 = arith.divf %32, %33 : vector<2x1xf32>
    %c0_23 = arith.constant 0 : index
    %c0_24 = arith.constant 0 : index
    %35 = vector.load %arg10[%c0_23, %c0_24] : memref<2x1xf32, #tpu.memory_space<vmem>>, vector<2x1xf32>
    tpu.vector_store %arg10[%c0_23, %c0_24], %34 {strides = array<i32>} : memref<2x1xf32, #tpu.memory_space<vmem>>, vector<2x1xf32>,
    return
  }
  func.func @transform_0(%arg0: i32) -> (i32, i32) {
    %c0_i32 = arith.constant 0 : i32
    %c0_i32_0 = arith.constant 0 : i32
    return %arg0, %c0_i32 : i32, i32
  }
  func.func @transform_1(%arg0: i32) -> (i32, i32) {
    %c0_i32 = arith.constant 0 : i32
    %c0_i32_0 = arith.constant 0 : i32
    return %arg0, %c0_i32 : i32, i32
  }
  func.func @transform_2(%arg0: i32) -> (i32, i32) {
    %c0_i32 = arith.constant 0 : i32
    %c0_i32_0 = arith.constant 0 : i32
    %c0_i32_1 = arith.constant 0 : i32
    return %c0_i32, %c0_i32_0 : i32, i32
  }
  func.func @transform_3(%arg0: i32) -> (i32, i32) {
    %c0_i32 = arith.constant 0 : i32
    %c0_i32_0 = arith.constant 0 : i32
    %c0_i32_1 = arith.constant 0 : i32
    return %c0_i32, %c0_i32_0 : i32, i32
  }
  func.func @transform_4(%arg0: i32) -> (i32, i32) {
    %c0_i32 = arith.constant 0 : i32
    %c0_i32_0 = arith.constant 0 : i32
    %c0_i32_1 = arith.constant 0 : i32
    return %c0_i32, %c0_i32_0 : i32, i32
  }
  func.func @transform_5(%arg0: i32) -> (i32, i32) {
    %c0_i32 = arith.constant 0 : i32
    %c0_i32_0 = arith.constant 0 : i32
    %c0_i32_1 = arith.constant 0 : i32
    return %c0_i32, %c0_i32_0 : i32, i32
  }
  func.func @transform_6(%arg0: i32) -> (i32, i32) {
    %c0_i32 = arith.constant 0 : i32
    %c0_i32_0 = arith.constant 0 : i32
    %c0_i32_1 = arith.constant 0 : i32
    return %c0_i32, %c0_i32_0 : i32, i32
  }
  func.func @transform_7(%arg0: i32) -> (i32, i32) {
    %c0_i32 = arith.constant 0 : i32
    %c0_i32_0 = arith.constant 0 : i32
    %c0_i32_1 = arith.constant 0 : i32
    return %c0_i32, %c0_i32_0 : i32, i32
  }
  func.func @transform_8(%arg0: i32) -> (i32, i32) {
    %c0_i32 = arith.constant 0 : i32
    %c0_i32_0 = arith.constant 0 : i32
    %c0_i32_1 = arith.constant 0 : i32
    return %c0_i32, %c0_i32_0 : i32, i32
  }
  func.func @transform_9(%arg0: i32) -> (i32, i32) {
    %c0_i32 = arith.constant 0 : i32
    %c0_i32_0 = arith.constant 0 : i32
    return %arg0, %c0_i32 : i32, i32
  }
}

</mosaic_0001>

<bundles_post_ra>
// kernel: tpu_custom_call.1
= control target key start
LH: loop header
LB: loop body
LE: loop exit
PB: predicated region body
PF: predicated region fallthrough
CT: control target
= control target key end

     0   :  { %s1534_s0 = inlined_call_operand.hbm [shape: f32[2,1024], index: 0, kind: input, shape index: {}]   ;;  %s1535_s1 = inlined_call_operand.vmem [shape: f32[2,32], index: 1, kind: input, shape index: {}]   ;;  %s1536_s2 = inlined_call_operand.hbm [shape: bf16[1024,128], index: 2, kind: input, shape index: {}]   ;;  %s1537_s3 = inlined_call_operand.hbm [shape: bf16[32,128], index: 3, kind: input, shape index: {}]   ;;  %s1538_s4 = inlined_call_operand.vmem [shape: f32[1,128], index: 4, kind: input, shape index: {}]   ;;  %s1539_s5 = inlined_call_operand.hbm [shape: bf16[128,128], index: 5, kind: input, shape index: {}]   ;;  %s1540_s6 = inlined_call_operand.vmem [shape: f32[1,128], index: 6, kind: input, shape index: {}]   ;;  %s1541_s7 = inlined_call_operand.vmem [shape: f32[1,128], index: 7, kind: input, shape index: {}]   ;;  %s1542_s8 = inlined_call_operand.<no memory space> [shape: f32[1,1], index: 8, kind: input, shape index: {}]   ;;  %s1543_s9 = inlined_call_operand.vmem [shape: f32[2,1], index: 9, kind: output, shape index: {}]  }
   0x1   :  { %v14_v0 = vstv %s1542_s8 }
   0x2   :  { %15 = vst [vmem:[#allocation2] sm:$0x1] %v14_v0 }
   0x3   :  { %16 = vsyncpa [#allocation4], 0 }
   0x4   :  { %17 = vsyncpa [#allocation6], 0 }
   0x5   :  { %18 = vsyncpa [#allocation9], 0  ;;  %s1416_s11 = smov [#allocation5]  }
   0x6   :  { %s36_s12 = sshll.u32 %s1416_s11, 4  ;;  %s37_s12 = int_to_ptr.vmem [resolvable:$true] %s36_s12 }
   0x7   :  { %s1338_s13 = scalar_lea.vmem %s37_s12, 8192  ;;  %p1343_p1 = scmp.lt.s32.totalorder %s37_s12, %s37_s12 }
   0x8   :  { %p1339_p0 = scmp.ne.s32.totalorder %s37_s12, %s1338_s13  ;;  %p1344_p2 = scmp.lt.s32.totalorder %s1338_s13, %s1338_s13 }
   0xa   :  { %p1345_p3 = por %p1344_p2, %p1343_p1 }
   0xc   :  { %p1346_p4 = pnand %p1345_p3, %p1339_p0 }
   0xe   :  { %1349 = shalt.err (!%p1346_p4)
}
   0xf   :  { %s1417_s14 = smov 64   ;;  %s1418_s15 = smov 4  }
  0x10   :  { %42 = dma.hbm_to_vmem [thread:$0]  %s1536_s2, 8192, %s37_s12, [#allocation6], %s1417_s14, %s1417_s14, %s1418_s15  }
  0x11   :  { %s1419_s17 = smov [#allocation3]   ;;  %s1420_s19 = smov [#allocation7]  }
  0x12   :  { %s25_s18 = sshll.u32 %s1419_s17, 4  ;;  %s48_s20 = sshll.u32 %s1420_s19, 4  ;;  %s26_s18 = int_to_ptr.vmem [resolvable:$true] %s25_s18  ;;  %s49_s20 = int_to_ptr.vmem [resolvable:$true] %s48_s20 }
  0x13   :  { %s1358_s21 = scalar_lea.vmem %s26_s18, 256  ;;  %p1363_p6 = scmp.lt.s32.totalorder %s26_s18, %s26_s18 }
  0x14   :  { %p1359_p5 = scmp.ne.s32.totalorder %s26_s18, %s1358_s21  ;;  %p1364_p7 = scmp.lt.s32.totalorder %s1358_s21, %s1358_s21 }
  0x16   :  { %p1365_p8 = por %p1364_p7, %p1363_p6 }
  0x18   :  { %p1366_p9 = pnand %p1365_p8, %p1359_p5 }
  0x1a   :  { %1369 = shalt.err (!%p1366_p9)
}
  0x1b   :  { %28 = dma.hbm_to_vmem [thread:$0]  %s1534_s0, 256, %s26_s18, [#allocation4]  }
  0x1c   :  { %s1378_s24 = scalar_lea.vmem %s49_s20, 256  ;;  %p1383_p11 = scmp.lt.s32.totalorder %s49_s20, %s49_s20 }
  0x1d   :  { %p1379_p10 = scmp.ne.s32.totalorder %s49_s20, %s1378_s24  ;;  %p1384_p12 = scmp.lt.s32.totalorder %s1378_s24, %s1378_s24 }
  0x1f   :  { %p1385_p13 = por %p1384_p12, %p1383_p11 }
  0x21   :  { %p1386_p0 = pnand %p1385_p13, %p1379_p10 }
  0x23   :  { %1389 = shalt.err (!%p1386_p0)
}
  0x24   :  { %54 = dma.hbm_to_vmem [thread:$0]  %s1537_s3, 256, %s49_s20, [#allocation6], %s1417_s14, %s1417_s14, %s1418_s15  }
  0x25   :  { %s1421_s26 = smov [#allocation8]  }
  0x26   :  { %s62_s27 = sshll.u32 %s1421_s26, 4  ;;  %s63_s27 = int_to_ptr.vmem [resolvable:$true] %s62_s27 }
  0x27   :  { %s1398_s28 = scalar_lea.vmem %s63_s27, 1024  ;;  %p1403_p2 = scmp.lt.s32.totalorder %s63_s27, %s63_s27 }
  0x28   :  { %p1399_p1 = scmp.ne.s32.totalorder %s63_s27, %s1398_s28  ;;  %p1404_p3 = scmp.lt.s32.totalorder %s1398_s28, %s1398_s28 }
  0x2a   :  { %p1405_p4 = por %p1404_p3, %p1403_p2 }
  0x2c   :  { %p1406_p5 = pnand %p1405_p4, %p1399_p1 }
  0x2e   :  { %1409 = shalt.err (!%p1406_p5)
}
  0x2f   :  { %68 = dma.hbm_to_vmem [thread:$0]  %s1539_s5, 1024, %s63_s27, [#allocation9], %s1417_s14, %s1417_s14, %s1418_s15  }
  0x30   :  { %1410 = dma.done.wait [#allocation4], 256  }
  0x31   :  { %1411 = vsyncadd [#allocation4], 4294967040 }
  0x32   :  { %1412 = dma.done.wait [#allocation6], 8448  }
  0x33   :  { %1413 = vsyncadd [#allocation6], 4294958848 }
  0x34   :  { %1414 = dma.done.wait [#allocation9], 1024  }
  0x35   :  { %1415 = vsyncadd [#allocation9], 4294966272  ;;  %v1422_v1 = vmov 0.0   ;;  %vm1423_vm0 = vmmov 0   ;;  %v1250_v2 = vld [vmem:[#allocation7 + $0x8] sm:$0xff]   ;;  %v1251_v3 = vld [vmem:[#allocation5 + $0x78] sm:$0xff]   ;;  %v96_v25 = vlaneseq }
  0x36   :  { %1213 = vmatprep.subr.bf16.mxu0 %v1422_v1  ;;  %1217 = vmatprep.mubr.msk.bf16.mxu0 %vm1423_vm0, %v1422_v1  ;;  %v1252_v4 = vld [vmem:[#allocation5 + $0x38] sm:$0xff]   ;;  %v1253_v5 = vld [vmem:[#allocation7] sm:$0xff]   ;;  %v1254_v6 = vld [vmem:[#allocation5 + $0x70] sm:$0xff]   ;;  %vm288_vm1 = vcmask 261120   ;;  %v1424_v23 = vmov 1983009808  }
  0x37   :  { %1214 = vmatpush3.bf16.msra.mxu0 %v1250_v2  ;;  %1116 = vmatprep.subr.bf16.mxu1 %v1251_v3  ;;  %v1255_v7 = vld [vmem:[#allocation5 + $0x30] sm:$0xff]   ;;  %v1256_v10 = vld [vmem:[#allocation5 + $0xf8] sm:$0xff]   ;;  %v1257_v11 = vld [vmem:[#allocation5 + $0x68] sm:$0xff]   ;;  %v94_v24 = vunpack.c.l.s4 %v1424_v23  ;;  %v97_v31 = vshrl.u32 %v96_v25, 7  ;;  %vm1006_vm2 = vcmask 1041408   ;;  %vm1024_vm3 = vcmask 1024  }
  0x38   :  { %1215 = vmatprep.subr.bf16.mxu0 %v1422_v1  ;;  %1117 = vmatpush3.bf16.msra.mxu1 %v1252_v4  ;;  %v142_v8 = vld [vmem:[%s1535_s1] sm:$0x3]  ;;  %v1258_v12 = vld [vmem:[#allocation5 + $0xb8] sm:$0xff]   ;;  %v1261_v15 = vld [vmem:[#allocation5 + $0x60] sm:$0xff]  }
  0x39   :  { %1118 = vmatprep.subr.bf16.mxu1 %v1254_v6  ;;  %v143_v9 = vpack.c.bf16 %v142_v8, %v142_v8  ;;  %v1259_v13 = vld [vmem:[#allocation5 + $0x28] sm:$0xff]   ;;  %v1260_v14 = vld [vmem:[#allocation5 + $0xf0] sm:$0xff]   ;;  %v1263_v17 = vld [vmem:[#allocation5 + $0x20] sm:$0xff]   ;;  %v95_v30 = vunpack.c.0.s8 %v94_v24 }
  0x3a   :  { %v1262_v16 = vld [vmem:[#allocation5 + $0xb0] sm:$0xff]   ;;  %v1264_v18 = vld [vmem:[#allocation5 + $0xe8] sm:$0xff]   ;;  %v1265_v19 = vld [vmem:[#allocation5 + $0x58] sm:$0xff]  }
  0x3b   :  { %1216 = vmatpush3.bf16.msra.mxu0 %v1253_v5  ;;  %v1266_v20 = vld [vmem:[#allocation5 + $0xa8] sm:$0xff]   ;;  %v1267_v21 = vld [vmem:[#allocation5 + $0x18] sm:$0xff]   ;;  %v1268_v22 = vld [vmem:[#allocation5 + $0xe0] sm:$0xff]   ;;  %v1506_v36 = vsub.s32 %v95_v30, %v97_v31 }
  0x3c   :  { %1119 = vmatpush3.bf16.msra.mxu1 %v1255_v7  ;;  %1138 = vmatprep.subr.bf16.mxu0 %v1256_v10  ;;  %v1269_v26 = vld [vmem:[#allocation5 + $0x50] sm:$0xff]   ;;  %v1270_v27 = vld [vmem:[#allocation5 + $0xa0] sm:$0xff]   ;;  %v1272_v29 = vld [vmem:[#allocation5 + $0xd8] sm:$0xff]  }
  0x3d   :  { %1120 = vmatprep.subr.bf16.mxu1 %v1257_v11  ;;  %v1271_v28 = vld [vmem:[#allocation5 + $0x10] sm:$0xff]   ;;  %v1273_v32 = vld [vmem:[#allocation5 + $0x48] sm:$0xff]   ;;  %v1274_v33 = vld [vmem:[#allocation5 + $0x98] sm:$0xff]  }
  0x3e   :  { %1218 = vmatmul.mubr.msk.bf16.vlgmr.msra.gmra.mxu0 %vm288_vm1, %v143_v9  ;;  %v1275_v34 = vld [vmem:[#allocation5 + $0x8] sm:$0xff]   ;;  %v1276_v35 = vld [vmem:[#allocation5 + $0xd0] sm:$0xff]   ;;  %v1277_v37 = vld [vmem:[#allocation5 + $0x40] sm:$0xff]  }
  0x3f   :  { %1139 = vmatpush3.bf16.msra.mxu0 %v1258_v12  ;;  %v1278_v38 = vld [vmem:[#allocation5 + $0x90] sm:$0xff]   ;;  %v1279_v39 = vld [vmem:[#allocation5] sm:$0xff]   ;;  %v1281_v43 = vld [vmem:[#allocation5 + $0xc8] sm:$0xff]  }
  0x40   :  { %1121 = vmatpush3.bf16.msra.mxu1 %v1259_v13  ;;  %1140 = vmatprep.subr.bf16.mxu0 %v1260_v14  ;;  %v88_v40 = vld [vmem:[#allocation3] sm:$0xff]  ;;  %v1282_v44 = vld [vmem:[#allocation5 + $0x88] sm:$0xff]   ;;  %v1283_v46 = vld [vmem:[#allocation5 + $0x178] sm:$0xff]  }
  0x41   :  { %1122 = vmatprep.subr.bf16.mxu1 %v1261_v15  ;;  %v92_v41 = vcombine.high %v88_v40, %v88_v40  ;;  %v99_v42 = vrot.slane %v88_v40, %v1506_v36  ;;  %v1284_v49 = vld [vmem:[#allocation5 + $0x138] sm:$0xff]   ;;  %v1285_v51 = vld [vmem:[#allocation5 + $0xc0] sm:$0xff]   ;;  %v1287_v54 = vld [vmem:[#allocation5 + $0x170] sm:$0xff]  }
  0x42   :  { %v1286_v53 = vld [vmem:[#allocation5 + $0x80] sm:$0xff]   ;;  %v1288_v56 = vld [vmem:[#allocation5 + $0x130] sm:$0xff]   ;;  %v1289_v58 = vld [vmem:[#allocation5 + $0x1f8] sm:$0xff]  }
  0x43   :  { %1141 = vmatpush3.bf16.msra.mxu0 %v1262_v16  ;;  %v107_v45 = vcombine.high %v99_v42, %v99_v42  ;;  %v106_v47 = vrot.slane %v92_v41, %v1506_v36  ;;  %v134_v48 = vpack.c.bf16 %v99_v42, %v99_v42  ;;  %v1290_v59 = vld [vmem:[#allocation5 + $0x168] sm:$0xff]   ;;  %v1291_v60 = vld [vmem:[#allocation5 + $0x1b8] sm:$0xff]   ;;  %v1293_v62 = vld [vmem:[#allocation5 + $0x1f0] sm:$0xff]  }
  0x44   :  { %1123 = vmatpush3.bf16.msra.mxu1 %v1263_v17  ;;  %1142 = vmatprep.subr.bf16.mxu0 %v1264_v18  ;;  %v1292_v61 = vld [vmem:[#allocation5 + $0x128] sm:$0xff]   ;;  %v1294_v63 = vld [vmem:[#allocation5 + $0x160] sm:$0xff]   ;;  %v1295_v0 = vld [vmem:[#allocation5 + $0x1b0] sm:$0xff]  }
  0x45   :  { %1124 = vmatprep.subr.bf16.mxu1 %v1265_v19  ;;  %v135_v50 = vpack.c.bf16 %v107_v45, %v107_v45  ;;  %v108_v52 = vcombine.high %v106_v47, %v106_v47  ;;  %v136_v57 = vpack.c.bf16 %v106_v47, %v106_v47  ;;  %v1296_v2 = vld [vmem:[#allocation5 + $0x120] sm:$0xff]   ;;  %v1297_v3 = vld [vmem:[#allocation5 + $0x1e8] sm:$0xff]   ;;  %v1298_v4 = vld [vmem:[#allocation5 + $0x158] sm:$0xff]  }
  0x46   :  { %v1299_v5 = vld [vmem:[#allocation5 + $0x1a8] sm:$0xff]   ;;  %v1300_v6 = vld [vmem:[#allocation5 + $0x118] sm:$0xff]   ;;  %v1301_v7 = vld [vmem:[#allocation5 + $0x1e0] sm:$0xff]  }
  0x47   :  { %1143 = vmatpush3.bf16.msra.mxu0 %v1266_v20  ;;  %748 = vmatprep.mubr.bf16.mxu1 %v135_v50  ;;  %v137_v55 = vpack.c.bf16 %v108_v52, %v108_v52  ;;  %v1302_v8 = vld [vmem:[#allocation5 + $0x150] sm:$0xff]   ;;  %v1303_v9 = vld [vmem:[#allocation5 + $0x1a0] sm:$0xff]   ;;  %v1305_v11 = vld [vmem:[#allocation5 + $0x1d8] sm:$0xff]  }
  0x48   :  { %1125 = vmatpush3.bf16.msra.mxu1 %v1267_v21  ;;  %1144 = vmatprep.subr.bf16.mxu0 %v1268_v22  ;;  %v1304_v10 = vld [vmem:[#allocation5 + $0x110] sm:$0xff]   ;;  %v1306_v12 = vld [vmem:[#allocation5 + $0x148] sm:$0xff]   ;;  %v1307_v13 = vld [vmem:[#allocation5 + $0x198] sm:$0xff]  }
  0x49   :  { %1126 = vmatprep.subr.bf16.mxu1 %v1269_v26  ;;  %788 = vmatprep.mubr.bf16.mxu0 %v137_v55  ;;  %v1308_v14 = vld [vmem:[#allocation5 + $0x108] sm:$0xff]   ;;  %v1309_v15 = vld [vmem:[#allocation5 + $0x1d0] sm:$0xff]   ;;  %v1310_v16 = vld [vmem:[#allocation5 + $0x140] sm:$0xff]  }
  0x4a   :  { %v1311_v17 = vld [vmem:[#allocation5 + $0x190] sm:$0xff]   ;;  %v1312_v18 = vld [vmem:[#allocation5 + $0x100] sm:$0xff]   ;;  %v89_v19 = vld [vmem:[#allocation3 + $0x8] sm:$0xff] }
  0x4b   :  { %1145 = vmatpush3.bf16.msra.mxu0 %v1270_v27  ;;  %v116_v20 = vrot.slane %v89_v19, %v1506_v36  ;;  %v1313_v21 = vld [vmem:[#allocation5 + $0x1c8] sm:$0xff]   ;;  %v109_v22 = vcombine.high %v89_v19, %v89_v19  ;;  %v1315_v25 = vld [vmem:[#allocation5 + $0x1c0] sm:$0xff]   ;;  %v1325_v40 = vld [vmem:[#allocation8] sm:$0xff]  }
  0x4c   :  { %1127 = vmatpush3.bf16.msra.mxu1 %v1271_v28  ;;  %1146 = vmatprep.subr.bf16.mxu0 %v1272_v29  ;;  %v1314_v23 = vld [vmem:[#allocation5 + $0x188] sm:$0xff]   ;;  %v1316_v28 = vld [vmem:[#allocation5 + $0x180] sm:$0xff]  }
  0x4d   :  { %1128 = vmatprep.subr.bf16.mxu1 %v1273_v32  ;;  %v124_v24 = vcombine.high %v116_v20, %v116_v20  ;;  %v123_v26 = vrot.slane %v109_v22, %v1506_v36  ;;  %v138_v27 = vpack.c.bf16 %v116_v20, %v116_v20  ;;  %v1321_v36 = vld [vmem:[#allocation8 + $0x20] sm:$0xff]   ;;  %v1111_v19 = vld [vmem:[#allocation2] ss:$0 sm:$0xff] }
  0x4f   :  { %1147 = vmatpush3.bf16.msra.mxu0 %v1274_v33  ;;  %v139_v29 = vpack.c.bf16 %v124_v24, %v124_v24  ;;  %v125_v30 = vcombine.high %v123_v26, %v123_v26  ;;  %v140_v32 = vpack.c.bf16 %v123_v26, %v123_v26  ;;  %v1318_v33 = vld [vmem:[#allocation8 + $0x38] sm:$0xff]  }
  0x50   :  { %1129 = vmatpush3.bf16.msra.mxu1 %v1275_v34  ;;  %1148 = vmatprep.subr.bf16.mxu0 %v1276_v35  ;;  %v1319_v34 = vld [vmem:[#allocation8 + $0x30] sm:$0xff]   ;;  %v1320_v35 = vld [vmem:[#allocation8 + $0x28] sm:$0xff]  }
  0x51   :  { %1130 = vmatprep.subr.bf16.mxu1 %v1277_v37  ;;  %v141_v31 = vpack.c.bf16 %v125_v30, %v125_v30  ;;  %v1322_v37 = vld [vmem:[#allocation8 + $0x18] sm:$0xff]  }
  0x53   :  { %1149 = vmatpush3.bf16.msra.mxu0 %v1278_v38  ;;  %v1323_v38 = vld [vmem:[#allocation8 + $0x10] sm:$0xff]  }
  0x54   :  { %1131 = vmatpush3.bf16.msra.mxu1 %v1279_v39  ;;  %1150 = vmatprep.subr.bf16.mxu0 %v1281_v43  ;;  %v1324_v39 = vld [vmem:[#allocation8 + $0x8] sm:$0xff]  }
  0x55   :  { %1160 = vmatprep.subr.bf16.mxu1 %v1283_v46 }
  0x57   :  { %1151 = vmatpush3.bf16.msra.mxu0 %v1282_v44  ;;  %749 = vmatmul.mubr.bf16.vlgmr.msra.gmra.mxu1 %v134_v48 }
  0x58   :  { %1152 = vmatprep.subr.bf16.mxu0 %v1285_v51  ;;  %1161 = vmatpush3.bf16.msra.mxu1 %v1284_v49 }
  0x59   :  { %1162 = vmatprep.subr.bf16.mxu1 %v1287_v54  ;;  %828 = vmatprep.mubr.bf16.mxu1 %v139_v29 }
  0x5b   :  { %1153 = vmatpush3.bf16.msra.mxu0 %v1286_v53 }
  0x5c   :  { %1182 = vmatprep.subr.bf16.mxu0 %v1289_v58  ;;  %1163 = vmatpush3.bf16.msra.mxu1 %v1288_v56 }
  0x5d   :  { %1164 = vmatprep.subr.bf16.mxu1 %v1290_v59 }
  0x5e   :  { %789 = vmatmul.mubr.bf16.vlgmr.msra.gmra.mxu0 %v136_v57 }
  0x5f   :  { %1183 = vmatpush3.bf16.msra.mxu0 %v1291_v60  ;;  %868 = vmatprep.mubr.bf16.mxu0 %v141_v31 }
  0x60   :  { %1184 = vmatprep.subr.bf16.mxu0 %v1293_v62  ;;  %1165 = vmatpush3.bf16.msra.mxu1 %v1292_v61 }
  0x61   :  { %1166 = vmatprep.subr.bf16.mxu1 %v1294_v63 }
  0x63   :  { %1185 = vmatpush3.bf16.msra.mxu0 %v1295_v0 }
  0x64   :  { %1186 = vmatprep.subr.bf16.mxu0 %v1297_v3  ;;  %1167 = vmatpush3.bf16.msra.mxu1 %v1296_v2  ;;  %v1100_v2 = vld [vmem:[%s1538_s4] ss:$0 sm:$0xff] }
  0x65   :  { %1168 = vmatprep.subr.bf16.mxu1 %v1298_v4 }
  0x67   :  { %1187 = vmatpush3.bf16.msra.mxu0 %v1299_v5 }
  0x68   :  { %1188 = vmatprep.subr.bf16.mxu0 %v1301_v7  ;;  %1169 = vmatpush3.bf16.msra.mxu1 %v1300_v6 }
  0x69   :  { %1170 = vmatprep.subr.bf16.mxu1 %v1302_v8 }
  0x6b   :  { %1189 = vmatpush3.bf16.msra.mxu0 %v1303_v9  ;;  %v1101_v9 = vld [vmem:[%s1540_s6] ss:$0 sm:$0xff] }
  0x6c   :  { %1190 = vmatprep.subr.bf16.mxu0 %v1305_v11  ;;  %1171 = vmatpush3.bf16.msra.mxu1 %v1304_v10 }
  0x6d   :  { %1172 = vmatprep.subr.bf16.mxu1 %v1306_v12 }
  0x6f   :  { %1191 = vmatpush3.bf16.msra.mxu0 %v1307_v13  ;;  %v1110_v13 = vld [vmem:[%s1541_s7] ss:$0 sm:$0xff] }
  0x70   :  { %1192 = vmatprep.subr.bf16.mxu0 %v1309_v15  ;;  %1173 = vmatpush3.bf16.msra.mxu1 %v1308_v14 }
  0x71   :  { %1174 = vmatprep.subr.bf16.mxu1 %v1310_v16 }
  0x73   :  { %1193 = vmatpush3.bf16.msra.mxu0 %v1311_v17 }
  0x74   :  { %1194 = vmatprep.subr.bf16.mxu0 %v1313_v21  ;;  %1175 = vmatpush3.bf16.msra.mxu1 %v1312_v18 }
  0x75   :  { %1221 = vmatprep.subr.bf16.mxu1 %v1422_v1 }
  0x77   :  { %1195 = vmatpush3.bf16.msra.mxu0 %v1314_v23  ;;  %829 = vmatmul.mubr.bf16.vlgmr.msra.gmra.mxu1 %v138_v27 }
  0x78   :  { %1196 = vmatprep.subr.bf16.mxu0 %v1315_v25  ;;  %1237 = vmatprep.mubr.msk.bf16.mxu1 %vm1423_vm0, %v1422_v1 }
  0x79   :  { %1222 = vmatpush3.bf16.msra.mxu1 %v1318_v33 }
  0x7a   :  { %1223 = vmatprep.subr.bf16.mxu1 %v1422_v1 }
  0x7b   :  { %1197 = vmatpush3.bf16.msra.mxu0 %v1316_v28 }
  0x7d   :  { %1224 = vmatpush3.bf16.msra.mxu1 %v1319_v34 }
  0x7e   :  { %869 = vmatmul.mubr.bf16.vlgmr.msra.gmra.mxu0 %v140_v32  ;;  %1225 = vmatprep.subr.bf16.mxu1 %v1422_v1 }
  0x81   :  { %1226 = vmatpush3.bf16.msra.mxu1 %v1320_v35 }
  0x82   :  { %1227 = vmatprep.subr.bf16.mxu1 %v1422_v1 }
  0x85   :  { %1228 = vmatpush3.bf16.msra.mxu1 %v1321_v36 }
  0x86   :  { %1229 = vmatprep.subr.bf16.mxu1 %v1422_v1 }
  0x89   :  { %1230 = vmatpush3.bf16.msra.mxu1 %v1322_v37 }
  0x8a   :  { %1231 = vmatprep.subr.bf16.mxu1 %v1422_v1 }
  0x8d   :  { %1232 = vmatpush3.bf16.msra.mxu1 %v1323_v38 }
  0x8e   :  { %1233 = vmatprep.subr.bf16.mxu1 %v1422_v1 }
  0x91   :  { %1234 = vmatpush3.bf16.msra.mxu1 %v1324_v39 }
  0x92   :  { %1235 = vmatprep.subr.bf16.mxu1 %v1422_v1 }
  0x95   :  { %1236 = vmatpush3.bf16.msra.mxu1 %v1325_v40 }
  0xfe   :  { %v326_v41 = vpop.f32.mrf.mxu0 }
 0x100   :  { %v1219_v42 = vpop.f32.mrf.mxu0 }
 0x102   :  { %v329_v43 = vpop.f32.mrf.mxu0 }
 0x104   :  { %v1220_v44 = vpop.f32.mrf.mxu0 }
 0x117   :  { %v1132_v45 = vpop.f32.mrf.mxu1 }
 0x119   :  { %v1133_v46 = vpop.f32.mrf.mxu1 }
 0x11a   :  { %v1134_v53 = vadd.f32 %v1133_v46, %v1132_v45 }
 0x11b   :  { %v1135_v47 = vpop.f32.mrf.mxu1 }
 0x11c   :  { %v751_v57 = vadd.f32 %v1134_v53, %v326_v41 }
 0x11d   :  { %v1136_v49 = vpop.f32.mrf.mxu1 }
 0x11e   :  { %v1154_v48 = vpop.f32.mrf.mxu0 }
 0x120   :  { %v1155_v50 = vpop.f32.mrf.mxu0 }
 0x121   :  { %v1156_v55 = vadd.f32 %v1155_v50, %v1154_v48 }
 0x122   :  { %v1157_v51 = vpop.f32.mrf.mxu0 }
 0x123   :  { %v791_v60 = vadd.f32 %v1156_v55, %v751_v57 }
 0x124   :  { %v1158_v52 = vpop.f32.mrf.mxu0 }
 0x137   :  { %v1176_v54 = vpop.f32.mrf.mxu1 }
 0x139   :  { %v1177_v56 = vpop.f32.mrf.mxu1 }
 0x13a   :  { %v1178_v1 = vadd.f32 %v1177_v56, %v1176_v54 }
 0x13b   :  { %v1179_v58 = vpop.f32.mrf.mxu1 }
 0x13c   :  { %v831_v63 = vadd.f32 %v1178_v1, %v791_v60 }
 0x13d   :  { %v1180_v61 = vpop.f32.mrf.mxu1 }
 0x13e   :  { %v1198_v59 = vpop.f32.mrf.mxu0 }
 0x140   :  { %v1199_v62 = vpop.f32.mrf.mxu0 }
 0x141   :  { %v1200_v0 = vadd.f32 %v1199_v62, %v1198_v59 }
 0x142   :  { %v1201_v3 = vpop.f32.mrf.mxu0 }
 0x143   :  { %v871_v4 = vadd.f32 %v1200_v0, %v831_v63 }
 0x144   :  { %v1202_v5 = vpop.f32.mrf.mxu0 }
 0x145   :  { %v883_v6 = vadd.f32 %v1100_v2, %v871_v4 }
 0x147   :  { %v884_v7 = vmax.f32 %v883_v6, 0.0 }
 0x149   :  { %v885_v8 = vpack.c.bf16 %v884_v7, %v884_v7 }
 0x14b   :  { %1238 = vmatmul.mubr.bf16.vlgmr.msra.gmra.mxu1 %v885_v8 }
 0x20b   :  { %v991_v10 = vpop.f32.mrf.mxu1 }
 0x20c   :  { %v992_v11 = vadd.f32 %v1101_v9, %v991_v10 }
 0x20d   :  { %v1239_v12 = vpop.f32.mrf.mxu1 }
 0x20e   :  { %v997_v14 = vmax.f32 %v992_v11, 0.0 }
 0x20f   :  { %v994_v15 = vpop.f32.mrf.mxu1 }
 0x210   :  { %v1005_v16 = vmul.f32 %v1110_v13, %v997_v14 }
 0x211   :  { %v1240_v17 = vpop.f32.mrf.mxu1 }
 0x212   :  { %v1007_v18 = vsel %vm1006_vm2, %v1005_v16, 0.0 }
 0x213   :  { %1008 = vadd.xlane.f32.xlu0 %v1007_v18 }
 0x29c   :  { %v1009_v20 = vpop.xlane.xlu0 %1008 }
 0x29d   :  { %v1017_v21 = vadd.f32 %v1111_v19, %v1009_v20 }
 0x29f   :  { %v1112_v22 = vmul.f32 -1.442695, %v1017_v21 }
 0x2a1   :  { %1326 = vpow2.f32 %v1112_v22 }
 0x2ae   :  { %v1327_v23 = vpop.eup %1326 }
 0x2af   :  { %v1021_v24 = vadd.f32 1.0, %v1327_v23 }
 0x2b1   :  { %1328 = vrcp.f32 %v1021_v24 }
 0x2be   :  { %v1329_v25 = vpop.eup %1328 }
 0x2bf   :  { %1025 = vst.msk [vmem:[%s1543_s9] sm:$0x3] %vm1024_vm3, %v1329_v25 }
 0x2c0   :  { %1030 = vsyncpa [#allocation4], 1 }
 0x2c1   :  { %1031 = vsyncpa [#allocation6], 1 }
 0x2c2   :  { %1032 = vsyncpa [#allocation9], 1 }

</bundles_post_ra>
